<compile_context>
chip_gen: v5e
topology: v5e:2x2
jax: 0.10.0
libtpu: 0.0.40
codegen_flags: <defaults>
</compile_context>

<pallas_src>
import jax
import jax.numpy as jnp
from jax.experimental import pallas as pl
from jax.experimental.pallas import tpu as pltpu


def _hbm_copy_kernel(table_hbm, out_hbm, sem):
    # Single HBM -> HBM DMA of the first seq_len rows of the table.
    seq_len = out_hbm.shape[0]  # static
    cp = pltpu.make_async_copy(
        table_hbm.at[pl.ds(0, seq_len), :],
        out_hbm,
        sem,
    )
    cp.start()
    cp.wait()


def positional_embeddings(table: jax.Array, seq_len: int) -> jax.Array:
    """Equivalent of PositionalEmbeddings.forward(seq_len).

    table: (max_seq_len, emb_size) embedding weight (nn.Embedding.weight).
    Returns (seq_len, emb_size) = table[0:seq_len, :].
    """
    max_seq_len, emb_size = table.shape
    assert 0 < seq_len <= max_seq_len
    itemsize = jnp.dtype(table.dtype).itemsize

    return pl.pallas_call(
        _hbm_copy_kernel,
        out_shape=jax.ShapeDtypeStruct((seq_len, emb_size), table.dtype),
        in_specs=[pl.BlockSpec(memory_space=pl.ANY)],
        out_specs=pl.BlockSpec(memory_space=pl.ANY),
        scratch_shapes=[pltpu.SemaphoreType.DMA(())],
        cost_estimate=pl.CostEstimate(
            flops=0,
            transcendentals=0,
            bytes_accessed=2 * seq_len * emb_size * itemsize,
        ),
    )(table)


if __name__ == "__main__":
    key = jax.random.PRNGKey(0)
    k_small, k_big = jax.random.split(key)

    # --- Small config consistent with the module. ---------------------------
    max_seq_len, emb_size, seq_len = 16, 128, 8
    table = jax.random.normal(k_small, (max_seq_len, emb_size), dtype=jnp.float32)

    embeds = jax.block_until_ready(positional_embeddings(table, seq_len))
    ref = table[jnp.arange(seq_len)]
    assert embeds.shape == (seq_len, emb_size), embeds.shape
    assert embeds.dtype == table.dtype
    assert bool(jnp.allclose(embeds, ref)), "mismatch vs reference lookup (small)"

    # --- Larger config, non-multiple-of-8 row count, exercises a big DMA. ---
    big_max, big_emb, big_seq = 4096, 512, 3000
    big_table = jax.random.normal(k_big, (big_max, big_emb), dtype=jnp.float32)

    big_out = jax.block_until_ready(positional_embeddings(big_table, big_seq))
    big_ref = big_table[jnp.arange(big_seq)]
    assert big_out.shape == (big_seq, big_emb), big_out.shape
    assert bool(jnp.allclose(big_out, big_ref)), "mismatch vs reference lookup (large)"

    print("KERNEL_OK")
</pallas_src>

<mosaic_0001>
module attributes {stable_mosaic.version = 11 : i64} {
  func.func @_hbm_copy_kernel(%arg0: memref<16x128xf32, #tpu.memory_space<any>>, %arg1: memref<8x128xf32, #tpu.memory_space<any>>, %arg2: memref<!tpu.dma_semaphore, #tpu.memory_space<semaphore_mem>>) attributes {dimension_semantics = [], scalar_prefetch = 0 : i64, scratch_operands = 1 : i64, tpu.core_type = #tpu.core_type<tc>} {
    %c0_i32 = arith.constant 0 : i32
    %c0_i32_0 = arith.constant 0 : i32
    %0 = tpu.memref_slice %arg0[%c0_i32, %c0_i32_0] : memref<16x128xf32, #tpu.memory_space<any>> -> memref<8x128xf32, #tpu.memory_space<any>>
    tpu.enqueue_dma source(%0 : memref<8x128xf32, #tpu.memory_space<any>>) target(%arg1 : memref<8x128xf32, #tpu.memory_space<any>>) target_semaphore(%arg2 : memref<!tpu.dma_semaphore, #tpu.memory_space<semaphore_mem>>)
    %c0_i32_1 = arith.constant 0 : i32
    %c0_i32_2 = arith.constant 0 : i32
    %1 = tpu.memref_slice %arg0[%c0_i32_1, %c0_i32_2] : memref<16x128xf32, #tpu.memory_space<any>> -> memref<8x128xf32, #tpu.memory_space<any>>
    tpu.wait_dma2 semaphore(%arg2 : memref<!tpu.dma_semaphore, #tpu.memory_space<semaphore_mem>>) src(%1 : memref<8x128xf32, #tpu.memory_space<any>>) dst(%arg1 : memref<8x128xf32, #tpu.memory_space<any>>)
    return
  }
}

</mosaic_0001>

<bundles_post_ra>
// kernel: tpu_custom_call.1
= control target key start
LH: loop header
LB: loop body
LE: loop exit
PB: predicated region body
PF: predicated region fallthrough
CT: control target
= control target key end

     0   :  { %s32_s12 = smov [#allocation2]   ;;  %s33_s13 = smov [#allocation3]   ;;  %s51_s0 = inlined_call_operand.hbm [shape: f32[16,128], index: 0, kind: input, shape index: {}]   ;;  %s52_s1 = inlined_call_operand.hbm [shape: f32[8,128], index: 1, kind: output, shape index: {}]  }
   0x1   :  { %s10_s8 = sshll.u32 %s51_s0, 4  ;;  %s12_s11 = sshll.u32 %s52_s1, 4  ;;  %s11_s8 = int_to_ptr.hbm [resolvable:$true] %s10_s8  ;;  %s13_s11 = int_to_ptr.hbm [resolvable:$true] %s12_s11 }
   0x2   :  { %s34_s14 = smov 0  }
   0x3   :  { %16 = dma.general %s11_s8, 128, %s13_s11, %s32_s12, %s33_s13, [#allocation4], %s34_s14, 0  }
   0x4   :  { %30 = dma.done.wait [#allocation2], 128 }
   0x5   :  { %31 = vsyncadd [#allocation2], 4294967168 }
   0x6   :  { %20 = vsyncmov [#allocation2] }
   0x9   :  { %s21_s15 = vpop.sfrf %20 }
   0xa   :  { %p26_p0 = scmp.ne.s32.totalorder %s21_s15, 0 }
   0xc   :  { %25 = shalt.err (%p26_p0)  }

</bundles_post_ra>
